<compile_context>
chip_gen: v7x
topology: tpu7x:2x2x1
jax: 0.10.0
libtpu: 0.0.40
codegen_flags: <defaults>
</compile_context>

<pallas_src>
import jax
import jax.numpy as jnp
import numpy as np
from jax import lax
from jax.experimental import pallas as pl
from jax.experimental.pallas import tpu as pltpu


def _stage_two_kernel(z1_ref, z_ref, chi_ref, binv_ref, w_ref,
                      out_ref, k_sc, acc_ref):
    j = pl.program_id(1)

    @pl.when(j == 0)
    def _init():
        # K(z, Z1) with inputs pre-scaled by 1/(sqrt(2)*sig): exp(-|z - z1|^2).
        # Unrolled VPU FMAs over the tiny feature dim d (no K=d MXU pass, no
        # cross-lane reductions, distances exactly >= 0).
        z1 = z1_ref[...]                                     # (d, Np) f32
        z = z_ref[...]                                       # (B, d)  f32
        d2 = jnp.zeros((z.shape[0], z1.shape[1]), jnp.float32)
        for k in range(z1.shape[0]):                         # d is tiny: static unroll
            diff = z[:, k:k + 1] - z1[k:k + 1, :]
            d2 = d2 + diff * diff
        k_sc[...] = jnp.exp(-d2).astype(k_sc.dtype)          # (B, Np) bf16
        acc_ref[...] = jnp.zeros_like(acc_ref)

    # gamma.T tile (brac_inv is symmetric, so no wrapper transpose):
    #   (B, TN) = K(z, Z1) @ brac_inv[:, tile]   — bf16 MXU, f32 accumulation.
    gamma_t = jnp.dot(k_sc[...], binv_ref[...],
                      preferred_element_type=jnp.float32)    # (B, TN) f32

    w = w_ref[...]                                           # (2, TN): [ones ; x]
    theta = chi_ref[...] * w[1:2, :]                         # (B, TN)
    cg = jnp.cos(theta) * gamma_t
    sg = jnp.sin(theta) * gamma_t

    # Fold the four lane reductions into two tiny MXU matmuls against the
    # lane-major W: column 0 -> sum(.), column 1 -> sum(. * x).
    dn = (((1,), (1,)), ((), ()))                            # contract lane axes
    part_c = lax.dot_general(cg, w, dn, preferred_element_type=jnp.float32)
    part_s = lax.dot_general(sg, w, dn, preferred_element_type=jnp.float32)
    acc_ref[:, 0:2] += part_c                                # [dc | nc]
    acc_ref[:, 2:4] += part_s                                # [ds | ns]

    @pl.when(j == pl.num_programs(1) - 1)
    def _finalize():
        out_ref[...] = acc_ref[...]                          # per-core partials (B, 4)


def _vmem_capacity_bytes():
    try:
        info = pltpu.get_tpu_info()
        return int(getattr(info, "vmem_capacity_bytes", 64 << 20))
    except Exception:
        return 64 << 20                 # conservative (v7x-sized) default


def _pick_tn(n, vmem_cap):
    """Column-tile width for the streamed (N, TN) bf16 brac_inv block.

    Generation-aware: ~vmem/4 bytes per buffer (the pipeline double-buffers),
    rounded down to a multiple of 256 lanes, clamped to [256, 2048], and never
    wider than ceil(N/2) rounded up to 128 so the 2-way core split has work.
    """
    per_buf_bytes = max(vmem_cap // 4, 8 << 20)
    tn = (per_buf_bytes // (2 * max(n, 1))) // 256 * 256
    tn = max(256, min(tn, 2048))
    half = -(-n // 2)
    half = -(-half // 128) * 128
    return int(min(tn, max(half, 128)))


def stage_two_forward(z1, z_batch, brac_inv, chi_batch, x, sig_z1, *, tn=None):
    """Pallas implementation of StageTwo.forward for one index batch.

    Returns a (B, 1) complex64 array == numer.value / denom.value.
    Perf note: the kernel is HBM-bound on the brac_inv stream; callers should
    fuse as many index rows as possible into one call (large B) so the stream
    is amortized across more useful work.
    """
    z1 = jnp.asarray(z1, jnp.float32)
    z_batch = jnp.asarray(z_batch, jnp.float32)
    brac_inv = jnp.asarray(brac_inv, jnp.float32)
    chi_batch = jnp.asarray(chi_batch, jnp.float32)
    x = jnp.asarray(x, jnp.float32).reshape(-1)

    N, d = z1.shape
    B = z_batch.shape[0]

    vmem_cap = _vmem_capacity_bytes()
    if tn is None:
        tn = _pick_tn(N, vmem_cap)
    # Pad N to a multiple of 2*tn: zero-padded brac_inv rows/cols (and x)
    # contribute nothing to the accumulators, and the tile count stays even
    # for the 2-way core split.
    n_pad = int(-(-N // (2 * tn)) * (2 * tn))
    pad_n = n_pad - N
    n_tiles = n_pad // tn
    tiles_per_core = n_tiles // 2

    # Pre-scale z / Z1 by 1/(sqrt(2)*sig) so the kernel computes exp(-|.|^2)
    # with no sigma constant (safe even if sig_z1 is a traced value).
    scale = 1.0 / (jnp.sqrt(jnp.float32(2.0)) * jnp.float32(sig_z1))
    z1_dn = jnp.pad(jnp.transpose(z1) * scale, ((0, 0), (0, pad_n)))   # (d, Np)
    z_bd = z_batch * scale                                             # (B, d)
    chi_b1 = chi_batch.reshape(B, 1)                                   # (B, 1)
    binv_bf = jnp.pad(brac_inv, ((0, pad_n), (0, pad_n))).astype(jnp.bfloat16)
    x_pad = jnp.pad(x, (0, pad_n))
    w_2n = jnp.stack([jnp.ones((n_pad,), jnp.float32), x_pad], axis=0)  # (2, Np)

    # VMEM budget: 2x bf16 brac_inv tile (double buffer) + K scratch + headroom,
    # capped just below this generation's physical VMEM.
    tile_bytes = n_pad * tn * 2
    need = 2 * tile_bytes + B * n_pad * 2 + 4 * (2 * n_pad * 4) + (8 << 20)
    vmem_limit = int(min(max(need, 32 << 20), vmem_cap - (2 << 20)))

    cost = pl.CostEstimate(
        flops=int(2 * B * n_pad * n_pad + 12 * B * n_pad),
        transcendentals=int(4 * B * n_pad),
        bytes_accessed=int(2 * n_pad * n_pad
                           + 4 * (d * n_pad + B * d + B + 2 * n_pad)
                           + 4 * 2 * B * 4),
    )

    parts = pl.pallas_call(
        _stage_two_kernel,
        out_shape=jax.ShapeDtypeStruct((2, B, 4), jnp.float32),
        grid_spec=pltpu.PrefetchScalarGridSpec(
            num_scalar_prefetch=0,
            grid=(2, tiles_per_core),
            in_specs=[
                pl.BlockSpec((d, n_pad), lambda c, j: (0, 0)),   # Z1^T (scaled, resident)
                pl.BlockSpec((B, d), lambda c, j: (0, 0)),       # z batch (scaled)
                pl.BlockSpec((B, 1), lambda c, j: (0, 0)),       # Chi batch
                pl.BlockSpec((n_pad, tn),                        # brac_inv col tile (bf16)
                             lambda c, j: (0, c * tiles_per_core + j)),
                pl.BlockSpec((2, tn),                            # W = [ones ; x] lane-major
                             lambda c, j: (0, c * tiles_per_core + j)),
            ],
            out_specs=pl.BlockSpec((None, B, 4), lambda c, j: (c, 0, 0)),
            scratch_shapes=[
                pltpu.VMEM((B, n_pad), jnp.bfloat16),            # K(z, Z1), computed once/core
                pltpu.VMEM((B, 4), jnp.float32),                 # [dc nc ds ns] accumulator
            ]),
        compiler_params=pltpu.CompilerParams(
            dimension_semantics=("parallel", "arbitrary"),       # cores x reduction tiles
            vmem_limit_bytes=vmem_limit),
        cost_estimate=cost,
    )(z1_dn, z_bd, chi_b1, binv_bf, w_2n)

    # Sum the per-core partials and do the exact complex division in f32.
    tot = parts[0] + parts[1]                                    # (B, 4)
    dc, nc, ds, ns = tot[:, 0], tot[:, 1], tot[:, 2], tot[:, 3]
    numer = nc + 1j * ns
    denom = dc + 1j * ds
    return (numer / denom).reshape(B, 1).astype(jnp.complex64)


def _rbf(a, b, sig):
    d2 = (jnp.sum(a * a, axis=-1)[:, None]
          + jnp.sum(b * b, axis=-1)[None, :]
          - 2.0 * a @ b.T)
    return jnp.exp(-d2 / (2.0 * sig ** 2))


if __name__ == "__main__":
    # Small, deterministic synthetic setup matching the module's data shapes.
    N, d_z, T, B = 128, 4, 32, 8        # N landmarks, d_z Z-dims, T train rows, B batch
    sig_z1 = 1.0
    lambd_star = 0.006888337

    key = jax.random.PRNGKey(0)
    k1, k2, k3, k4, k5 = jax.random.split(key, 5)
    Z1 = jax.random.normal(k1, (N, d_z), dtype=jnp.float32)
    M1 = jax.random.normal(k2, (N,), dtype=jnp.float32)
    N1 = jax.random.normal(k3, (N,), dtype=jnp.float32)
    x = (M1 + N1) / 2.0                                   # the learnable parameter init

    train_Z = jax.random.normal(k4, (T, d_z), dtype=jnp.float32)
    train_Chi = 0.1 * jax.random.normal(k5, (T, 1), dtype=jnp.float32)
    idx = jnp.arange(B)

    # Init-time glue mirroring __init__: brac_inv = inv(make_psd(K.ZZ) + N*lambd*I).
    # (RBF gram of Z1 with itself is already PSD here.)
    K_ZZ = _rbf(Z1, Z1, sig_z1)
    brac_inv = jnp.linalg.inv(
        K_ZZ + N * lambd_star * jnp.eye(N, dtype=jnp.float32))

    z_batch = train_Z[idx]
    chi_batch = train_Chi[idx]

    out = stage_two_forward(Z1, z_batch, brac_inv, chi_batch, x, sig_z1)
    out = jax.block_until_ready(out)

    # Pure-JAX reference (same math as the PyTorch forward) for a sanity check.
    K_Zz = _rbf(Z1, z_batch, sig_z1)                      # (N, B)
    gamma = brac_inv @ K_Zz                               # (N, B)
    theta = chi_batch @ x.reshape(1, -1)                  # (B, N)
    cos_t, sin_t = jnp.cos(theta), jnp.sin(theta)
    dc = jnp.sum(cos_t * gamma.T, axis=-1, keepdims=True)
    ds = jnp.sum(sin_t * gamma.T, axis=-1, keepdims=True)
    nc = jnp.sum(cos_t * gamma.T * x.reshape(1, -1), axis=-1, keepdims=True)
    ns = jnp.sum(sin_t * gamma.T * x.reshape(1, -1), axis=-1, keepdims=True)
    ref = (nc + 1j * ns) / (dc + 1j * ds)

    # Tolerance accommodates the bf16 MXU path for the (B,N)@(N,N) matmul.
    np.testing.assert_allclose(np.asarray(out), np.asarray(ref),
                               rtol=3e-2, atol=2e-3)
    print("KERNEL_OK")
</pallas_src>

<mosaic_0001>
module attributes {stable_mosaic.version = 11 : i64} {
  func.func @_stage_two_kernel(%arg0: i32, %arg1: i32, %arg2: memref<4x256xf32, #tpu.memory_space<vmem>>, %arg3: memref<8x4xf32, #tpu.memory_space<vmem>>, %arg4: memref<8x1xf32, #tpu.memory_space<vmem>>, %arg5: memref<256x128xbf16, #tpu.memory_space<vmem>>, %arg6: memref<2x128xf32, #tpu.memory_space<vmem>>, %arg7: memref<1x8x4xf32, #tpu.memory_space<vmem>>, %arg8: memref<8x256xbf16, #tpu.memory_space<vmem>>, %arg9: memref<8x4xf32, #tpu.memory_space<vmem>>) attributes {dimension_semantics = [#tpu.dimension_semantics<parallel>, #tpu.dimension_semantics<arbitrary>], iteration_bounds = array<i64: 2, 1>, scalar_prefetch = 0 : i64, scratch_operands = 2 : i64, tpu.core_type = #tpu.core_type<tc>, window_params = [{pipeline_mode = #tpu.pipeline_mode<synchronous>, transform_indices = @transform_0, window_bounds = array<i64: 4, 256>}, {pipeline_mode = #tpu.pipeline_mode<synchronous>, transform_indices = @transform_1, window_bounds = array<i64: 8, 4>}, {pipeline_mode = #tpu.pipeline_mode<synchronous>, transform_indices = @transform_2, window_bounds = array<i64: 8, 1>}, {transform_indices = @transform_3, window_bounds = array<i64: 256, 128>}, {transform_indices = @transform_4, window_bounds = array<i64: 2, 128>}, {transform_indices = @transform_5, window_bounds = array<i64: 1, 8, 4>}]} {
    %c0_i32 = arith.constant 0 : i32
    %0 = arith.cmpi eq, %arg1, %c0_i32 : i32
    %1 = arith.extui %0 : i1 to i32
    %c0_i32_0 = arith.constant 0 : i32
    %2 = arith.cmpi ne, %1, %c0_i32_0 : i32
    scf.if %2 {
      %c0_19 = arith.constant 0 : index
      %c0_20 = arith.constant 0 : index
      %27 = vector.load %arg2[%c0_19, %c0_20] : memref<4x256xf32, #tpu.memory_space<vmem>>, vector<4x256xf32>
      %c0_21 = arith.constant 0 : index
      %c0_22 = arith.constant 0 : index
      %28 = vector.load %arg3[%c0_21, %c0_22] : memref<8x4xf32, #tpu.memory_space<vmem>>, vector<8x4xf32>
      %cst_23 = arith.constant 0.000000e+00 : f32
      %29 = vector.broadcast %cst_23 : f32 to vector<8x256xf32>
      %30 = vector.extract_strided_slice %28 {offsets = [0, 0], sizes = [8, 1], strides = [1, 1]} : vector<8x4xf32> to vector<8x1xf32>
      %31 = vector.extract_strided_slice %27 {offsets = [0, 0], sizes = [1, 256], strides = [1, 1]} : vector<4x256xf32> to vector<1x256xf32>
      %32 = vector.broadcast %30 : vector<8x1xf32> to vector<8x256xf32>
      %33 = vector.broadcast %31 : vector<1x256xf32> to vector<8x256xf32>
      %34 = arith.subf %32, %33 : vector<8x256xf32>
      %35 = arith.mulf %34, %34 : vector<8x256xf32>
      %36 = arith.addf %29, %35 : vector<8x256xf32>
      %37 = vector.extract_strided_slice %28 {offsets = [0, 1], sizes = [8, 1], strides = [1, 1]} : vector<8x4xf32> to vector<8x1xf32>
      %38 = vector.extract_strided_slice %27 {offsets = [1, 0], sizes = [1, 256], strides = [1, 1]} : vector<4x256xf32> to vector<1x256xf32>
      %39 = vector.broadcast %37 : vector<8x1xf32> to vector<8x256xf32>
      %40 = vector.broadcast %38 : vector<1x256xf32> to vector<8x256xf32>
      %41 = arith.subf %39, %40 : vector<8x256xf32>
      %42 = arith.mulf %41, %41 : vector<8x256xf32>
      %43 = arith.addf %36, %42 : vector<8x256xf32>
      %44 = vector.extract_strided_slice %28 {offsets = [0, 2], sizes = [8, 1], strides = [1, 1]} : vector<8x4xf32> to vector<8x1xf32>
      %45 = vector.extract_strided_slice %27 {offsets = [2, 0], sizes = [1, 256], strides = [1, 1]} : vector<4x256xf32> to vector<1x256xf32>
      %46 = vector.broadcast %44 : vector<8x1xf32> to vector<8x256xf32>
      %47 = vector.broadcast %45 : vector<1x256xf32> to vector<8x256xf32>
      %48 = arith.subf %46, %47 : vector<8x256xf32>
      %49 = arith.mulf %48, %48 : vector<8x256xf32>
      %50 = arith.addf %43, %49 : vector<8x256xf32>
      %51 = vector.extract_strided_slice %28 {offsets = [0, 3], sizes = [8, 1], strides = [1, 1]} : vector<8x4xf32> to vector<8x1xf32>
      %52 = vector.extract_strided_slice %27 {offsets = [3, 0], sizes = [1, 256], strides = [1, 1]} : vector<4x256xf32> to vector<1x256xf32>
      %53 = vector.broadcast %51 : vector<8x1xf32> to vector<8x256xf32>
      %54 = vector.broadcast %52 : vector<1x256xf32> to vector<8x256xf32>
      %55 = arith.subf %53, %54 : vector<8x256xf32>
      %56 = arith.mulf %55, %55 : vector<8x256xf32>
      %57 = arith.addf %50, %56 : vector<8x256xf32>
      %cst_24 = arith.constant 0.000000e+00 : f32
      %58 = vector.broadcast %cst_24 : f32 to vector<8x256xf32>
      %59 = arith.subf %58, %57 : vector<8x256xf32>
      %60 = math.exp %59 : vector<8x256xf32>
      %61 = arith.truncf %60 : vector<8x256xf32> to vector<8x256xbf16>
      %c0_25 = arith.constant 0 : index
      %c0_26 = arith.constant 0 : index
      %62 = vector.load %arg8[%c0_25, %c0_26] : memref<8x256xbf16, #tpu.memory_space<vmem>>, vector<8x256xbf16>
      tpu.vector_store %arg8[%c0_25, %c0_26], %61 {strides = array<i32>} : memref<8x256xbf16, #tpu.memory_space<vmem>>, vector<8x256xbf16>,
      %cst_27 = arith.constant 0.000000e+00 : f32
      %63 = vector.broadcast %cst_27 : f32 to vector<8x4xf32>
      %c0_28 = arith.constant 0 : index
      %c0_29 = arith.constant 0 : index
      %64 = vector.load %arg9[%c0_28, %c0_29] : memref<8x4xf32, #tpu.memory_space<vmem>>, vector<8x4xf32>
      tpu.vector_store %arg9[%c0_28, %c0_29], %63 {strides = array<i32>} : memref<8x4xf32, #tpu.memory_space<vmem>>, vector<8x4xf32>,
    } else {
    }
    %c0 = arith.constant 0 : index
    %c0_1 = arith.constant 0 : index
    %3 = vector.load %arg8[%c0, %c0_1] : memref<8x256xbf16, #tpu.memory_space<vmem>>, vector<8x256xbf16>
    %c0_2 = arith.constant 0 : index
    %c0_3 = arith.constant 0 : index
    %4 = vector.load %arg5[%c0_2, %c0_3] : memref<256x128xbf16, #tpu.memory_space<vmem>>, vector<256x128xbf16>
    %cst = arith.constant dense<0.000000e+00> : vector<8x128xf32>
    %5 = tpu.matmul %3, %4, %cst {dimension_numbers = #tpu.dot_dimension_numbers<[1], [0], [0], [1], [0, 0, 1, 1], [], []>} : vector<8x256xbf16>, vector<256x128xbf16>, vector<8x128xf32> -> vector<8x128xf32>
    %c0_4 = arith.constant 0 : index
    %c0_5 = arith.constant 0 : index
    %6 = vector.load %arg6[%c0_4, %c0_5] : memref<2x128xf32, #tpu.memory_space<vmem>>, vector<2x128xf32>
    %c0_6 = arith.constant 0 : index
    %c0_7 = arith.constant 0 : index
    %7 = vector.load %arg4[%c0_6, %c0_7] : memref<8x1xf32, #tpu.memory_space<vmem>>, vector<8x1xf32>
    %8 = vector.extract_strided_slice %6 {offsets = [1, 0], sizes = [1, 128], strides = [1, 1]} : vector<2x128xf32> to vector<1x128xf32>
    %9 = vector.broadcast %7 : vector<8x1xf32> to vector<8x128xf32>
    %10 = vector.broadcast %8 : vector<1x128xf32> to vector<8x128xf32>
    %11 = arith.mulf %9, %10 : vector<8x128xf32>
    %12 = math.cos %11 : vector<8x128xf32>
    %13 = arith.mulf %12, %5 : vector<8x128xf32>
    %14 = math.sin %11 : vector<8x128xf32>
    %15 = arith.mulf %14, %5 : vector<8x128xf32>
    %cst_8 = arith.constant dense<0.000000e+00> : vector<8x2xf32>
    %16 = tpu.matmul %13, %6, %cst_8 {dimension_numbers = #tpu.dot_dimension_numbers<[1], [1], [0], [0], [0, 0, 1, 0], [], []>} : vector<8x128xf32>, vector<2x128xf32>, vector<8x2xf32> -> vector<8x2xf32>
    %cst_9 = arith.constant dense<0.000000e+00> : vector<8x2xf32>
    %17 = tpu.matmul %15, %6, %cst_9 {dimension_numbers = #tpu.dot_dimension_numbers<[1], [1], [0], [0], [0, 0, 1, 0], [], []>} : vector<8x128xf32>, vector<2x128xf32>, vector<8x2xf32> -> vector<8x2xf32>
    %c0_10 = arith.constant 0 : index
    %c0_11 = arith.constant 0 : index
    %18 = vector.load %arg9[%c0_10, %c0_11] : memref<8x4xf32, #tpu.memory_space<vmem>>, vector<8x2xf32>
    %19 = arith.addf %18, %16 : vector<8x2xf32>
    %c0_12 = arith.constant 0 : index
    %c0_13 = arith.constant 0 : index
    %20 = vector.load %arg9[%c0_12, %c0_13] : memref<8x4xf32, #tpu.memory_space<vmem>>, vector<8x2xf32>
    tpu.vector_store %arg9[%c0_12, %c0_13], %19 {strides = array<i32>} : memref<8x4xf32, #tpu.memory_space<vmem>>, vector<8x2xf32>,
    %c0_14 = arith.constant 0 : index
    %c2 = arith.constant 2 : index
    %21 = vector.load %arg9[%c0_14, %c2] : memref<8x4xf32, #tpu.memory_space<vmem>>, vector<8x2xf32>
    %22 = arith.addf %21, %17 : vector<8x2xf32>
    %c0_15 = arith.constant 0 : index
    %c2_16 = arith.constant 2 : index
    %23 = vector.load %arg9[%c0_15, %c2_16] : memref<8x4xf32, #tpu.memory_space<vmem>>, vector<8x2xf32>
    tpu.vector_store %arg9[%c0_15, %c2_16], %22 {strides = array<i32>} : memref<8x4xf32, #tpu.memory_space<vmem>>, vector<8x2xf32>,
    %c0_i32_17 = arith.constant 0 : i32
    %24 = arith.cmpi eq, %arg1, %c0_i32_17 : i32
    %25 = arith.extui %24 : i1 to i32
    %c0_i32_18 = arith.constant 0 : i32
    %26 = arith.cmpi ne, %25, %c0_i32_18 : i32
    scf.if %26 {
      %c0_19 = arith.constant 0 : index
      %c0_20 = arith.constant 0 : index
      %27 = vector.load %arg9[%c0_19, %c0_20] : memref<8x4xf32, #tpu.memory_space<vmem>>, vector<8x4xf32>
      %c0_21 = arith.constant 0 : index
      %c0_22 = arith.constant 0 : index
      %c0_23 = arith.constant 0 : index
      %28 = vector.load %arg7[%c0_21, %c0_22, %c0_23] : memref<1x8x4xf32, #tpu.memory_space<vmem>>, vector<1x8x4xf32>
      %29 = vector.shape_cast %28 : vector<1x8x4xf32> to vector<8x4xf32>
      %30 = vector.shape_cast %27 : vector<8x4xf32> to vector<1x8x4xf32>
      tpu.vector_store %arg7[%c0_21, %c0_22, %c0_23], %30 {strides = array<i32>} : memref<1x8x4xf32, #tpu.memory_space<vmem>>, vector<1x8x4xf32>,
    } else {
    }
    return
  }
  func.func @transform_0(%arg0: i32, %arg1: i32) -> (i32, i32) {
    %c0_i32 = arith.constant 0 : i32
    %c0_i32_0 = arith.constant 0 : i32
    %c0_i32_1 = arith.constant 0 : i32
    return %c0_i32, %c0_i32_0 : i32, i32
  }
  func.func @transform_1(%arg0: i32, %arg1: i32) -> (i32, i32) {
    %c0_i32 = arith.constant 0 : i32
    %c0_i32_0 = arith.constant 0 : i32
    %c0_i32_1 = arith.constant 0 : i32
    return %c0_i32, %c0_i32_0 : i32, i32
  }
  func.func @transform_2(%arg0: i32, %arg1: i32) -> (i32, i32) {
    %c0_i32 = arith.constant 0 : i32
    %c0_i32_0 = arith.constant 0 : i32
    %c0_i32_1 = arith.constant 0 : i32
    return %c0_i32, %c0_i32_0 : i32, i32
  }
  func.func @transform_3(%arg0: i32, %arg1: i32) -> (i32, i32) {
    %c1_i32 = arith.constant 1 : i32
    %0 = arith.muli %arg0, %c1_i32 : i32
    %1 = arith.addi %0, %arg1 : i32
    %c0_i32 = arith.constant 0 : i32
    %c0_i32_0 = arith.constant 0 : i32
    return %c0_i32, %1 : i32, i32
  }
  func.func @transform_4(%arg0: i32, %arg1: i32) -> (i32, i32) {
    %c1_i32 = arith.constant 1 : i32
    %0 = arith.muli %arg0, %c1_i32 : i32
    %1 = arith.addi %0, %arg1 : i32
    %c0_i32 = arith.constant 0 : i32
    %c0_i32_0 = arith.constant 0 : i32
    return %c0_i32, %1 : i32, i32
  }
  func.func @transform_5(%arg0: i32, %arg1: i32) -> (i32, i32, i32) {
    %c0_i32 = arith.constant 0 : i32
    %c0_i32_0 = arith.constant 0 : i32
    %c0_i32_1 = arith.constant 0 : i32
    return %arg0, %c0_i32, %c0_i32_0 : i32, i32, i32
  }
}

</mosaic_0001>

<bundles_post_ra>
// kernel: tpu_custom_call.1
= control target key start
LH: loop header
LB: loop body
LE: loop exit
PB: predicated region body
PF: predicated region fallthrough
CT: control target
= control target key end

     0   :  { %10 = vsyncpa [#allocation5], 0  ;;  %s1570_s0 = inlined_call_operand.vmem [shape: f32[4,256], index: 0, kind: input, shape index: {}]   ;;  %s1571_s1 = inlined_call_operand.vmem [shape: f32[8,4], index: 1, kind: input, shape index: {}]   ;;  %s1572_s2 = inlined_call_operand.vmem [shape: f32[8,1], index: 2, kind: input, shape index: {}]   ;;  %s1573_s3 = inlined_call_operand.hbm [shape: bf16[256,256], index: 3, kind: input, shape index: {}]   ;;  %s1574_s4 = inlined_call_operand.vmem [shape: f32[2,256], index: 4, kind: input, shape index: {}]   ;;  %s1575_s5 = inlined_call_operand.vmem [shape: f32[2,8,4], index: 5, kind: output, shape index: {}]  }
   0x1   :  { %12 = vsyncpa [#allocation5 + $0x1], 0  ;;  %s1373_s18 = smov 0   ;;  %s1375_s19 = smov 0  }
   0x2   :  { %s1377_s20 = smov 0   ;;  %s1379_s21 = smov 0  }
   0x3   :  { %s1381_s22 = smov 0   ;;  %s1383_s23 = smov 0  }
   0x4 LB: > { %s1061_s24 = sadd.s32 4294967295, %s1324_s23   ;;  %s30_s25 = sadd.s32 1, %s1320_s22  ;;  %s1324_s23 = sphi %s1383_s23, %s18_s23   ;;  %s1320_s22 = sphi %s1381_s22, %s1584_s22   ;;  %s1316_s21 = sphi %s1379_s21, %s1583_s21   ;;  %s1312_s20 = sphi %s1377_s20, %s1582_s20   ;;  %s1308_s19 = sphi %s1375_s19, %s1581_s19   ;;  %s1304_s18 = sphi %s1373_s18, %s1580_s18  }
   0x5   : > { %p32_p0 = scmp.ge.s32.totalorder %s30_s25, 2  ;;  %s102_s26 = sadd.s32 1, %s1312_s20 }
   0x6   : > { %p109_p1 = scmp.ne.s32.totalorder %s1312_s20, %s1308_s19  ;;  %p110_p2 = scmp.eq.s32.totalorder %s1324_s23, 0 }
   0x7   : > { %s1586_s25 = smov (%p32_p0, %s30_s25), 0  ;;  %p115_p4 = scmp.ne.s32.totalorder %s1308_s19, %s1304_s18 }
   0x8   : > { %p1409_p3 = por %p110_p2, %p109_p1  ;;  %s99_s28 = ssub.s32 %s1320_s22, %s1586_s25 }
   0x9   : > { %p116_p5 = scmp.eq.s32.totalorder %s1061_s24, 0  ;;  %p100_p6 = scmp.eq.s32.totalorder %s99_s28, 0 }
   0xa   : > { %p1149_p8 = scmp.lt.s32.totalorder %s1324_s23, 2  ;;  %s202_s6 = sand.u32 1, %s1312_s20  }
   0xb   : > { %p1416_p7 = por %p116_p5, %p115_p4  ;;  %s1066_s7 = sshll.u32 %s1320_s22, 6 }
   0xc   : > { %s1422_s30 = scalar_select %p100_p6, %s1312_s20, %s102_s26  }
   0xd   : > { %s1065_s8 = sshll.u32 %s202_s6, 7  ;;  %s1429_s11 = scalar_lea.hbm %s1573_s3, %s1066_s7 }
   0xe   : > { %s206_s12 = scalar_lea.vmem [#allocation4], %s1065_s8  ;;  %p1433_p9 = pnand %p1149_p8, %p1409_p3 }
   0xf   : > { %s213_s13 = sshll.u32 %s206_s12, 4  ;;  %s1440_s15 = scalar_lea.sflag [#allocation5], %s202_s6  ;;  %s1437_s13 = int_to_ptr.vmem [resolvable:$true] %s213_s13 }
  0x10   : > { %s1244_s16 = scalar_lea.hbm %s1429_s11, 2048  ;;  %p1246_p12 = pneg %p1433_p9 }
  0x11   : > { %p1245_p11 = scmp.ne.s32.totalorder %s1429_s11, %s1244_s16  ;;  %s1249_s24 = scalar_lea.hbm %s1573_s3, 4096 }
  0x12   : > { %p1250_p1 = scmp.lt.u32.totalorder %s1429_s11, %s1573_s3  ;;  %p1251_p2 = scmp.lt.u32.totalorder %s1249_s24, %s1244_s16 }
  0x13   : > { %p1247_p13 = pnand %p1246_p12, %p1245_p11  ;;  %p1253_p4 = scmp.lt.u32.totalorder %s1244_s16, %s1429_s11 }
  0x14   : > { %p1252_p3 = por %p1251_p2, %p1250_p1 }
  0x15   : > { %p1248_p0 = pneg %p1247_p13 }
  0x16   : > { %p1254_p5 = por %p1253_p4, %p1252_p3 }
  0x18   : > { %p1255_p6 = pnand %p1254_p5, %p1248_p0 }
  0x1a   : > { %1258 = shalt.err (!%p1255_p6)
}
  0x1b   : > { %s1259_s28 = scalar_lea.vmem %s1437_s13, 2048  ;;  %s1326_s6 = smov [#allocation4]  }
  0x1c   : > { %p1260_p8 = scmp.ne.s32.totalorder %s1437_s13, %s1259_s28  ;;  %s1264_s7 = sshll.u32 %s1326_s6, 4  ;;  %s1265_s7 = int_to_ptr.vmem [resolvable:$false] %s1264_s7 }
  0x1d   : > { %s1266_s8 = scalar_lea.vmem %s1265_s7, 4096  ;;  %p1267_p10 = scmp.lt.s32.totalorder %s1437_s13, %s1265_s7 }
  0x1e   : > { %p1262_p11 = pnand %p1260_p8, %p1246_p12  ;;  %p1268_p1 = scmp.lt.s32.totalorder %s1266_s8, %s1259_s28 }
  0x20   : > { %p1263_p13 = pneg %p1262_p11  ;;  %p1269_p2 = por %p1268_p1, %p1267_p10 }
  0x22   : > { %p1270_p3 = pnand %p1269_p2, %p1263_p13 }
  0x24   : > { %1273 = shalt.err (!%p1270_p3)
}
  0x25   : > { %s1327_s9 = smov 128   ;;  %s1328_s10 = smov 64  }
  0x26   : > { %s1329_s12 = smov 4   ;;  %p230_p12 = scmp.lt.s32.totalorder %s1324_s23, 3 }
  0x27   : > { %1148 = dma.hbm_to_vmem [thread:$0]  (!%p1433_p9), %s1429_s11, 2048, %s1437_s13, %s1440_s15, %s1327_s9, %s1328_s10, %s1329_s12  }
  0x28   : > { %p1579_p0 = scmp.ge.s32.totalorder %s1324_s23, 1 }
  0x2a   : > { %p231_p4 = pnand %p1579_p0, %p230_p12 }
  0x2b   : > { %s236_s16 = sand.u32 (!%p231_p4), 1, %s1308_s19  }
  0x2c   : > { %234 = sbr.rel (%p231_p4) target bundleno = 775 (0x307), region = 40  ;;  %s1068_s17 = sshll.u32 (!%p231_p4), %s236_s16, 7 }
  0x2d   : > { %s237_s18 = scalar_lea.sflag (!%p231_p4), [#allocation5], %s236_s16  ;;  %s1472_s24 = scalar_lea.vmem (!%p231_p4), [#allocation4], %s1068_s17 }
  0x33   : > { %1299 = dma.done.wait (%p1416_p7), %s237_s18, 2048  }
  0x34   : > { %1301 = vsyncadd (%p1416_p7), %s237_s18, 4294965248  ;;  %v1330_v0 = vmov 0   ;;  %v1331_v1 = vmov 2   ;;  %v288_v2 = vld [vmem:[%s1571_s1] sm:$0xff]  ;;  %v1220_v3 = vld [vmem:[%s1472_s24 + $0x40] sm:$0xff]   ;;  %v1332_v6 = vmov 1   ;;  %v295_v22 = vlaneseq }
  0x35   : > { %1214 = vset.pattern.permute.xlu0 %v1330_v0  ;;  %1216 = vset.pattern.permute.xlu1 %v1331_v1  ;;  %v1221_v4 = vld [vmem:[%s1472_s24] sm:$0xff]   ;;  %v1222_v5 = vld [vmem:[%s1472_s24 + $0x48] sm:$0xff]   ;;  %v1333_v7 = vmov 3   ;;  %v597_v9 = vld [vmem:[%s1572_s2] sm:$0xff]  ;;  %p273_p7 = scmp.lt.s32.totalorder %s1316_s21, 1  ;;  %s1342_s8 = smov 2  }
  0x36   : > { %291 = vperm.xlu0 %1214, %v288_v2   ;;  %348 = vperm.xlu1 %1216, %v288_v2   ;;  %v1223_v8 = vld [vmem:[%s1472_s24 + $0x8] sm:$0xff]   ;;  %v1224_v10 = vld [vmem:[%s1472_s24 + $0x50] sm:$0xff]   ;;  %v1226_v12 = vld [vmem:[%s1472_s24 + $0x58] sm:$0xff]   ;;  %v296_v23 = vshrl.u32 %v295_v22, 7 }
  0x37   : > { %1103 = vmatprep.subr.bf16.mxu0 %v1220_v3  ;;  %v1225_v11 = vld [vmem:[%s1472_s24 + $0x10] sm:$0xff]   ;;  %v1227_v13 = vld [vmem:[%s1472_s24 + $0x18] sm:$0xff]   ;;  %v1228_v14 = vld [vmem:[%s1472_s24 + $0x60] sm:$0xff]   ;;  %s1588_s21 = smov (!%p273_p7, %s1316_s21), 1 }
  0x38   : > { %1104 = vmatpush3.bf16.msra.mxu0 %v1221_v4  ;;  %v1229_v15 = vld [vmem:[%s1472_s24 + $0x20] sm:$0xff]   ;;  %v1230_v16 = vld [vmem:[%s1472_s24 + $0x68] sm:$0xff]   ;;  %v1232_v18 = vld [vmem:[%s1472_s24 + $0x70] sm:$0xff]   ;;  %v297_v24 = vsub.s32 0, %v296_v23  ;;  %v301_v25 = vsub.s32 4, %v296_v23  ;;  %v353_v27 = vsub.s32 2, %v296_v23 }
  0x39   : > { %1105 = vmatprep.subr.bf16.mxu0 %v1222_v5  ;;  %v1231_v17 = vld [vmem:[%s1472_s24 + $0x28] sm:$0xff]   ;;  %v1233_v19 = vld [vmem:[%s1472_s24 + $0x30] sm:$0xff]   ;;  %v1234_v20 = vld [vmem:[%s1472_s24 + $0x78] sm:$0xff]   ;;  %v357_v28 = vsub.s32 6, %v296_v23  ;;  %v325_v29 = vsub.s32 1, %v296_v23  ;;  %v329_v30 = vsub.s32 5, %v296_v23 }
  0x3a   : > { %1215 = vset.pattern.permute.xlu0 %v1332_v6  ;;  %1217 = vset.pattern.permute.xlu1 %v1333_v7  ;;  %v1235_v21 = vld [vmem:[%s1472_s24 + $0x38] sm:$0xff]   ;;  %v381_v31 = vsub.s32 3, %v296_v23  ;;  %v385_v32 = vsub.s32 7, %v296_v23  ;;  %s1069_s27 = sshll.u32 %s1588_s21, 1  ;;  %s1070_s9 = sshll.u32 %s1588_s21, 3 }
  0x3b   : > { %320 = vperm.xlu0 %1215, %v288_v2   ;;  %376 = vperm.xlu1 %1217, %v288_v2   ;;  %v287_v26 = vld [vmem:[%s1570_s0] sm:$0xff]  ;;  %s276_s7 = scalar_lea.vmem %s1574_s4, %s1069_s27  ;;  %s281_s16 = scalar_lea.vmem %s1575_s5, %s1070_s9 }
  0x3c   : > { %1106 = vmatpush3.bf16.msra.mxu0 %v1223_v8  ;;  %v298_v33 = vrot.slane %v287_v26, %v297_v24  ;;  %v302_v34 = vrot.slane %v287_v26, %v301_v25  ;;  %v354_v35 = vrot.slane %v287_v26, %v353_v27  ;;  %v358_v36 = vrot.slane %v287_v26, %v357_v28  ;;  %v1511_v53 = vld [vmem:[%s276_s7] sm:$0x3] }
  0x3d   : > { %1107 = vmatprep.subr.bf16.mxu0 %v1224_v10  ;;  %v326_v37 = vrot.slane %v287_v26, %v325_v29  ;;  %v330_v38 = vrot.slane %v287_v26, %v329_v30  ;;  %v382_v39 = vrot.slane %v287_v26, %v381_v31  ;;  %v386_v40 = vrot.slane %v287_v26, %v385_v32 }
  0x3e   : > { %v308_v42 = vrot.slane %v298_v33, %v297_v24  ;;  %v312_v43 = vrot.slane %v302_v34, %v297_v24  ;;  %v364_v45 = vrot.slane %v354_v35, %v353_v27  ;;  %v368_v46 = vrot.slane %v358_v36, %v353_v27 }
  0x3f   : > { %1218 = vset.pattern.permute.xlu1 %v1330_v0  ;;  %1219 = vset.pattern.permute.xlu0 %v1330_v0  ;;  %v336_v47 = vrot.slane %v326_v37, %v325_v29  ;;  %v340_v48 = vrot.slane %v330_v38, %v325_v29  ;;  %v392_v49 = vrot.slane %v382_v39, %v381_v31  ;;  %v1334_v30 = vmov 683565275  }
  0x40   : > { %600 = vperm.xlu1 %1218, %v597_v9   ;;  %1108 = vmatpush3.bf16.msra.mxu0 %v1225_v11  ;;  %v396_v50 = vrot.slane %v386_v40, %v381_v31  ;;  %v606_v62 = vrot.slane %v1511_v53, %v325_v29  ;;  %v1335_v32 = vmov 2475754826   ;;  %v1336_v34 = vmov 2131351028  }
  0x41   : > { %1109 = vmatprep.subr.bf16.mxu0 %v1226_v12  ;;  %v1337_v36 = vmov 2102212464   ;;  %v1338_v38 = vmov 920167782  }
  0x44   : > { %1110 = vmatpush3.bf16.msra.mxu0 %v1227_v13 }
  0x45   : > { %1111 = vmatprep.subr.bf16.mxu0 %v1228_v14 }
  0x48   : > { %1112 = vmatpush3.bf16.msra.mxu0 %v1229_v15 }
  0x49   : > { %1113 = vmatprep.subr.bf16.mxu0 %v1230_v16 }
  0x4c   : > { %1114 = vmatpush3.bf16.msra.mxu0 %v1231_v17 }
  0x4d   : > { %1115 = vmatprep.subr.bf16.mxu0 %v1232_v18 }
  0x50   : > { %1116 = vmatpush3.bf16.msra.mxu0 %v1233_v19 }
  0x51   : > { %1117 = vmatprep.subr.bf16.mxu0 %v1234_v20 }
  0x54   : > { %1118 = vmatpush3.bf16.msra.mxu0 %v1235_v21 }
  0xb5   : > { %v292_v41 = vpop.permute.xlu0 %291  ;;  %v349_v44 = vpop.permute.xlu1 %348 }
  0xb6   : > { %v313_v51 = vsub.f32 %v292_v41, %v308_v42  ;;  %v314_v52 = vsub.f32 %v292_v41, %v312_v43  ;;  %v369_v54 = vsub.f32 %v349_v44, %v364_v45  ;;  %v370_v55 = vsub.f32 %v349_v44, %v368_v46 }
  0xb7   : > { %v1339_v45 = vmov 1326507024  }
  0xb8   : > { %v315_v63 = vmul.f32 %v313_v51, %v313_v51  ;;  %v316_v0 = vmul.f32 %v314_v52, %v314_v52  ;;  %v371_v3 = vmul.f32 %v369_v54, %v369_v54  ;;  %v372_v4 = vmul.f32 %v370_v55, %v370_v55 }
  0xba   : > { %v321_v56 = vpop.permute.xlu0 %320  ;;  %v377_v57 = vpop.permute.xlu1 %376 }
  0xbb   : > { %v341_v58 = vsub.f32 %v321_v56, %v336_v47  ;;  %v342_v59 = vsub.f32 %v321_v56, %v340_v48  ;;  %v397_v60 = vsub.f32 %v377_v57, %v392_v49  ;;  %v398_v61 = vsub.f32 %v377_v57, %v396_v50 }
  0xbd   : > { %v343_v1 = vmul.f32 %v341_v58, %v341_v58  ;;  %v344_v2 = vmul.f32 %v342_v59, %v342_v59  ;;  %v399_v7 = vmul.f32 %v397_v60, %v397_v60  ;;  %v400_v8 = vmul.f32 %v398_v61, %v398_v61 }
  0xbf   : > { %v345_v5 = vadd.f32 %v343_v1, %v315_v63  ;;  %v346_v6 = vadd.f32 %v344_v2, %v316_v0  ;;  %v601_v9 = vpop.permute.xlu1 %600 }
  0xc0   : > { %v1514_v10 = vmul.f32 %v606_v62, %v601_v9 }
  0xc1   : > { %v373_v11 = vadd.f32 %v371_v3, %v345_v5  ;;  %v374_v12 = vadd.f32 %v372_v4, %v346_v6 }
  0xc2   : > { %v611_v13 = vand.u32 2139095040, %v1514_v10  ;;  %v608_v19 = vand.u32 2147483647, %v1514_v10  ;;  %vm610_vm7 = vcmp.lt.s32.totalorder %v1514_v10, 0  ;;  %vm700_vm15 = vweird.f32 %v1514_v10 }
  0xc3   : > { %v401_v14 = vadd.f32 %v399_v7, %v373_v11  ;;  %v402_v15 = vadd.f32 %v400_v8, %v374_v12 }
  0xc4   : > { %v612_v16 = vshrl.u32 %v611_v13, 23  ;;  %v615_v24 = vand.u32 8388607, %v608_v19  ;;  %vm609_vm8 = vcmp.le.f32.partialorder %v608_v19, 0.7853982 }
  0xc5   : > { %v403_v17 = vsub.f32 0.0, %v401_v14  ;;  %v404_v18 = vsub.f32 0.0, %v402_v15 }
  0xc6   : > { %v1090_v20 = vadd.s32 4294967169, %v612_v16  ;;  %v616_v27 = vor.u32 8388608, %v615_v24 }
  0xc7   : > { %v405_v21 = vmul.f32 1.442695, %v403_v17  ;;  %v407_v22 = vmul.f32 1.442695, %v404_v18 }
  0xc8   : > { %v618_v23 = vadd.s32 1, %v1090_v20  ;;  %v656_v47 = vshll.u32 %v616_v27, 8 }
  0xc9   : > { %1236 = vpow2.f32 %v405_v21 }
  0xca   : > { %1238 = vpow2.f32 %v407_v22  ;;  %vm619_vm0 = vcmp.gt.s32.totalorder %v618_v23, 0 }
  0xcb   : > { %v620_v25 = vsel %vm619_vm0, %v618_v23, 0  ;;  %vm418_vm0 = vcmask 31744  }
  0xcc   : > { %v622_v26 = vand.u32 31, %v620_v25  ;;  %v621_v28 = vshrl.u32 %v620_v25, 5 }
  0xce   : > { %v623_v29 = vsub.s32 32, %v622_v26  ;;  %v625_v31 = vshll.u32 %v1334_v30, %v622_v26  ;;  %v628_v33 = vshll.u32 %v1335_v32, %v622_v26  ;;  %v631_v35 = vshll.u32 %v1336_v34, %v622_v26 }
  0xcf   : > { %v634_v37 = vshll.u32 %v1337_v36, %v622_v26  ;;  %v637_v39 = vshll.u32 %v1338_v38, %v622_v26  ;;  %vm640_vm1 = vcmp.lt.s32.totalorder %v621_v28, 1  ;;  %vm643_vm2 = vcmp.lt.s32.totalorder %v621_v28, 4 }
  0xd0   : > { %v624_v40 = vshrl.u32 %v1334_v30, %v623_v29  ;;  %v626_v41 = vshrl.u32 %v1335_v32, %v623_v29  ;;  %v629_v42 = vshrl.u32 %v1336_v34, %v623_v29  ;;  %v632_v43 = vshrl.u32 %v1337_v36, %v623_v29 }
  0xd1   : > { %v635_v44 = vshrl.u32 %v1338_v38, %v623_v29  ;;  %v638_v46 = vshrl.u32 %v1339_v45, %v623_v29  ;;  %vm641_vm3 = vcmp.lt.s32.totalorder %v621_v28, 2  ;;  %vm642_vm4 = vcmp.lt.s32.totalorder %v621_v28, 3 }
  0xd2   : > { %v627_v48 = vor.u32 %v626_v41, %v625_v31  ;;  %v630_v49 = vor.u32 %v629_v42, %v628_v33  ;;  %v633_v50 = vor.u32 %v632_v43, %v631_v35 }
  0xd3   : > { %v1237_v51 = vpop.eup %1236  ;;  %v636_v52 = vor.u32 %v635_v44, %v634_v37  ;;  %v639_v54 = vor.u32 %v638_v46, %v637_v39 }
  0xd4   : > { %v1239_v55 = vpop.eup %1238  ;;  %v1101_v56 = vpack.c.bf16 %v1237_v51, %v1237_v51  ;;  %v644_v57 = vsel %vm640_vm1, %v624_v40, %v627_v48  ;;  %v645_v58 = vsel %vm643_vm2, %v633_v50, 2102212464  ;;  %v648_v59 = vsel %vm640_vm1, %v627_v48, %v630_v49 }
  0xd5   : > { %v1102_v60 = vpack.c.bf16 %v1239_v55, %v1239_v55  ;;  %v646_v61 = vsel %vm642_vm4, %v630_v49, %v645_v58  ;;  %v649_v62 = vsel %vm643_vm2, %v636_v52, 920167782  ;;  %v652_v63 = vsel %vm640_vm1, %v630_v49, %v633_v50 }
  0xd6   : > { %v650_v0 = vsel %vm642_vm4, %v633_v50, %v649_v62  ;;  %v653_v1 = vsel %vm643_vm2, %v639_v54, 1326507024  ;;  %v647_v4 = vsel %vm641_vm3, %v644_v57, %v646_v61  ;;  %v1340_v58 = vmov 0.0  }
  0xd7   : > { %588 = vmatprep.mubr.bf16.mxu0 %v1102_v60  ;;  %v651_v2 = vsel %vm641_vm3, %v648_v59, %v650_v0  ;;  %v654_v3 = vsel %vm642_vm4, %v636_v52, %v653_v1  ;;  %v663_v11 = vmul.u32 %v656_v47, %v647_v4  ;;  %1129 = vmatprep.subr.mxu1 %v1340_v58  ;;  %vm1341_vm1 = vmmov 0  }
  0xd8   : > { %589 = vmatmul.mubr.bf16.vlgmr.msra.gmra.mrb[0].mxu0 %v1101_v56  ;;  %v655_v5 = vsel %vm641_vm3, %v652_v63, %v654_v3  ;;  %v1529_v6 = vmul.u32.u64.low %v656_v47, %v651_v2  ;;  %v1530_v7 = vmul.u32.u64.high %v656_v47, %v651_v2, %v1529_v6  ;;  %1130 = vmatpush3.xpose.msra.mxu1 %v1511_v53  ;;  %419 = vst.msk [vmem:[#allocation3] sm:$0xff] %vm418_vm0, %v1340_v58  ;;  %vm959_vm2 = vcmask 15360  }
  0xd9   : > { %v1532_v8 = vmul.u32.u64.low %v656_v47, %v655_v5  ;;  %v1533_v9 = vmul.u32.u64.high %v656_v47, %v655_v5, %v1532_v8  ;;  %1134 = vmatprep.subr.mxu1 %v1340_v58  ;;  %1131 = vmatprep.mubr.msk.f32.mxu1 %vm1341_vm1, %v1340_v58  ;;  %vm967_vm3 = vcmask 31760  }
  0xda   : > { %v666_v12 = vadd.s32 1, %v1530_v7 }
  0xdb   : > { %vm665_vm5 = vc.u32 %v1533_v9, %v1529_v6  ;;  %v664_v24 = vadd.s32 %v1529_v6, %v1533_v9 }
  0xdc   : > { %v667_v13 = vsel %vm665_vm5, %v666_v12, %v1530_v7 }
  0xdd   : > { %v668_v14 = vadd.s32 %v667_v13, %v663_v11 }
  0xdf   : > { %v669_v15 = vadd.s32 536870912, %v668_v14  ;;  %v957_v1 = vld [vmem:[#allocation3] sm:$0xff] }
  0xe1   : > { %v670_v16 = vshrl.u32 %v669_v15, 30 }
  0xe3   : > { %v671_v17 = vshll.u32 %v670_v16, 30  ;;  %v694_v36 = vsub.s32 4, %v670_v16 }
  0xe5   : > { %v672_v18 = vsub.s32 %v668_v14, %v671_v17  ;;  %v695_v39 = vsel %vm610_vm7, %v694_v36, %v670_v16 }
  0xe6   : > { %v697_v42 = vsel %vm609_vm8, 0, %v695_v39 }
  0xe7   : > { %v674_v20 = vsub.s32 0, %v672_v18  ;;  %v805_v43 = vadd.s32 3, %v697_v42  ;;  %v701_v44 = vand.u32 3, %v697_v42 }
  0xe9   : > { %v1091_v21 = vmin.u32 %v674_v20, %v672_v18  ;;  %v806_v45 = vand.u32 3, %v805_v43  ;;  %vm706_vm9 = vcmp.eq.s32.totalorder %v701_v44, 2  ;;  %vm703_vm11 = vcmp.eq.s32.totalorder %v701_v44, 0 }
  0xea   : > { %vm702_vm13 = vcmp.lt.s32.totalorder %v701_v44, 2 }
  0xeb   : > { %v676_v22 = vclz %v1091_v21  ;;  %vm811_vm10 = vcmp.eq.s32.totalorder %v806_v45, 2  ;;  %vm808_vm12 = vcmp.eq.s32.totalorder %v806_v45, 0  ;;  %vm807_vm14 = vcmp.lt.s32.totalorder %v806_v45, 2 }
  0xed   : > { %v1092_v23 = vadd.s32 4294967294, %v676_v22 }
  0xef   : > { %vm1093_vm6 = vcmp.lt.s32.totalorder %v1092_v23, 0 }
  0xf0   : > { %v679_v25 = vsel %vm1093_vm6, 0, %v1092_v23 }
  0xf1   : > { %v680_v26 = vsub.s32 32, %v679_v25  ;;  %v681_v27 = vshll.u32 %v672_v18, %v679_v25  ;;  %v684_v28 = vsub.s32 4294967266, %v679_v25 }
  0xf3   : > { %v682_v29 = vshrl.u32 %v664_v24, %v680_v26  ;;  %v685_v30 = vadd.s32 127, %v684_v28 }
  0xf5   : > { %v683_v31 = vor.u32 %v682_v29, %v681_v27  ;;  %v686_v32 = vshll.u32 %v685_v30, 23 }
  0xf7   : > { %v687_v33 = vor.u32 4788187, %v686_v32  ;;  %v690_v34 = vcvt.s32.f32 %v683_v31 }
  0xf9   : > { %v688_v35 = vand.u32 2147483647, %v687_v33 }
  0xfb   : > { %v691_v37 = vmul.f32 %v690_v34, %v688_v35 }
  0xfd   : > { %v692_v38 = vxor.u32 2147483648, %v691_v37 }
  0xff   : > { %v693_v40 = vsel %vm610_vm7, %v692_v38, %v691_v37 }
 0x100   : > { %v696_v41 = vsel %vm609_vm8, %v1514_v10, %v693_v40 }
 0x101   : > { %1240 = vcosq.f32 %v696_v41 }
 0x102   : > { %1242 = vsinq.f32 %v696_v41 }
 0x10b   : > { %v1241_v46 = vpop.eup %1240 }
 0x10c   : > { %v1243_v47 = vpop.eup %1242  ;;  %v707_v48 = vxor.u32 2147483648, %v1241_v46 }
 0x10d   : > { %v704_v19 = vxor.u32 2147483648, %v1243_v47 }
 0x10e   : > { %v708_v49 = vsel %vm706_vm9, %v707_v48, %v1243_v47  ;;  %v813_v50 = vsel %vm811_vm10, %v707_v48, %v1243_v47 }
 0x10f   : > { %v705_v51 = vsel %vm703_vm11, %v1241_v46, %v704_v19  ;;  %v810_v52 = vsel %vm808_vm12, %v1241_v46, %v704_v19 }
 0x110   : > { %v709_v54 = vsel %vm702_vm13, %v705_v51, %v708_v49  ;;  %v814_v55 = vsel %vm807_vm14, %v810_v52, %v813_v50 }
 0x111   : > { %v710_v56 = vsel %vm700_vm15, nan, %v709_v54  ;;  %v815_v57 = vsel %vm700_vm15, nan, %v814_v55 }
 0x1ab   : > { %v1119_v59 = vpop.f32.mrb[0].mxu0 }
 0x1ac   : > { %v1120_v10 = vpop.f32.mrb[1].mxu0 }
 0x1ad   : > { %v1121_v60 = vadd.f32 %v1120_v10, %v1119_v59  ;;  %v1122_v61 = vpop.f32.mrb[2].mxu0 }
 0x1ae   : > { %v1123_v62 = vpop.f32.mrb[3].mxu0 }
 0x1af   : > { %v711_v63 = vmul.f32 %v1121_v60, %v710_v56  ;;  %v816_v0 = vmul.f32 %v1121_v60, %v815_v57 }
 0x1b1   : > { %1132 = vmatmul.mubr.f32.vlgmr.msra.gmra.mrb[0].mxu1 %v711_v63 }
 0x1b2   : > { %1135 = vmatpush3.xpose.msra.mxu1 %v1511_v53  ;;  %1136 = vmatprep.mubr.msk.f32.mxu1 %vm1341_vm1, %v1340_v58 }
 0x1b5   : > { %1137 = vmatmul.mubr.f32.vlgmr.msra.gmra.mrb[2].mxu1 %v816_v0 }
 0x284   : > { %v883_v2 = vpop.f32.mrb[0].mxu1 }
 0x285   : > { %v958_v3 = vadd.f32 %v957_v1, %v883_v2  ;;  %v1133_v4 = vpop.f32.mrb[1].mxu1 }
 0x287   : > { %960 = vst.msk [vmem:[#allocation3] sm:$0xff] %vm959_vm2, %v958_v3 }
 0x288   : > { %v953_v5 = vpop.f32.mrb[2].mxu1 }
 0x289   : > { %963 = vrot.lane.b32.xlu0 %v953_v5, %s1342_s8  ;;  %v1138_v6 = vpop.f32.mrb[3].mxu1 }
 0x28e   : > { %v961_v7 = vld [vmem:[#allocation3] sm:$0xff] }
 0x2fb   : > { %v964_v8 = vpop.permute.xlu0 %963 }
 0x2fc   : > { %v966_v9 = vadd.f32 %v964_v8, %v961_v7 }
 0x2fe   : > { %968 = vst.msk [vmem:[#allocation3] sm:$0xff] %vm967_vm3, %v966_v9 }
 0x305   : > { %v972_v53 = vld [vmem:[#allocation3] sm:$0xff] }
 0x306   : > { %974 = vst.msk [vmem:[%s281_s16] sm:$0xff] %vm418_vm0, %v972_v53 }
 0x307 PF: > { %s18_s23 = sadd.s32 1, %s1324_s23   ;;  %s1580_s18 = smov %s1308_s19 }
 0x308   : > { %p15_p9 = scmp.ge.s32.totalorder %s18_s23, 4   ;;  %s1581_s19 = smov %s1312_s20 }
 0x309   : > { %s1582_s20 = smov %s1422_s30  ;;  %s1583_s21 = smov %s1320_s22 }
 0x30a   : > { %s1584_s22 = smov %s1586_s25  ;;  %17 = sbr.rel (!%p15_p9) target bundleno = 4 (0x4), region = 91 }
 0x311   :  { %994 = vsyncpa [#allocation5], 1 }
 0x312   :  { %996 = vsyncpa [#allocation5 + $0x1], 1 }

</bundles_post_ra>
